<compile_context>
chip_gen: v7x
topology: tpu7x:2x2x1
jax: 0.10.0
libtpu: 0.0.40
codegen_flags: <defaults>
</compile_context>

<pallas_src>
import jax
import jax.numpy as jnp
from jax.experimental import pallas as pl
from jax.experimental.pallas import tpu as pltpu

IN_FEATURES = 25 * 25   # 625
OUT_FEATURES = 2


def linear_kernel(x_ref, wb_ref, o_ref):
    # x_ref:  (1, 625) f32
    # wb_ref: (2, 626) f32 -- torch (out, in) weight layout with the bias
    #         folded into column 625.
    # o_ref:  (2, 1) f32
    # VPU broadcast-multiply + XLU lane reduction; MXU deliberately unused.
    prod = x_ref[...] * wb_ref[:, :IN_FEATURES]                      # (2, 625)
    bias = wb_ref[:, IN_FEATURES:IN_FEATURES + 1]                    # (2, 1)
    o_ref[...] = jnp.sum(prod, axis=-1, keepdims=True) + bias        # (2, 1)


def pack_params(weight, bias):
    """One-time (init-time) packing of nn.Linear params.

    weight: (2, 625)  (PyTorch nn.Linear convention: (out, in))
    bias:   (2,)
    returns (2, 626) f32 with bias in the last column.
    """
    w = weight.astype(jnp.float32)
    b = bias.reshape(OUT_FEATURES, 1).astype(jnp.float32)
    return jnp.concatenate([w, b], axis=1)          # (2, 626)


def linear_model_forward(x, packed_wb):
    """Mirrors LinearModel.forward.

    x:         total element count must be 625 (torch's x.view(-1) constraint,
               i.e. batch_size == 1 with a 25x25 input)
    packed_wb: (2, 626) from pack_params(weight, bias)
    """
    batch_size = x.shape[0]
    # TODO(synk): like the original torch .view(-1), this hard-codes that the
    # whole input has exactly 625 elements (batch_size == 1).
    x_flat = x.reshape(1, IN_FEATURES).astype(jnp.float32)

    vmem = lambda: pl.BlockSpec(memory_space=pltpu.MemorySpace.VMEM)

    # Padded f32 VMEM tiles: x (8,640), wb (8,640), out (8,128).
    padded_bytes = 4 * (8 * 640 + 8 * 640 + 8 * 128)

    out = pl.pallas_call(
        linear_kernel,
        out_shape=jax.ShapeDtypeStruct((OUT_FEATURES, 1), jnp.float32),
        in_specs=[vmem(), vmem()],
        out_specs=vmem(),
        cost_estimate=pl.CostEstimate(
            flops=2 * IN_FEATURES * OUT_FEATURES,
            transcendentals=0,
            bytes_accessed=padded_bytes,
        ),
    )(x_flat, packed_wb)

    # torch: .view(batch_size, -1)  -> (1, 2)
    return out.reshape(batch_size, -1)


if __name__ == "__main__":
    key = jax.random.PRNGKey(0)
    k_x, k_w, k_b = jax.random.split(key, 3)

    # Input consistent with the forward: total elements must equal 625,
    # so batch_size = 1, spatial 25x25 (matches nn.Linear(25*25, 2)).
    x = jax.random.normal(k_x, (1, 25, 25), dtype=jnp.float32)

    # Deterministic parameter init (same shapes as nn.Linear(625, 2)).
    bound = 1.0 / (IN_FEATURES ** 0.5)
    weight = jax.random.uniform(
        k_w, (OUT_FEATURES, IN_FEATURES), minval=-bound, maxval=bound,
        dtype=jnp.float32)
    bias = jax.random.uniform(
        k_b, (OUT_FEATURES,), minval=-bound, maxval=bound, dtype=jnp.float32)

    # Pack once at "init time", reuse across calls.
    packed_wb = pack_params(weight, bias)

    y = linear_model_forward(x, packed_wb)
    y = jax.block_until_ready(y)

    # Reference check in plain JAX.
    ref = (x.reshape(-1) @ weight.T + bias).reshape(x.shape[0], -1)
    assert y.shape == (1, 2), y.shape
    assert jnp.allclose(y, ref, atol=1e-5, rtol=1e-5), (y, ref)

    print("KERNEL_OK")
</pallas_src>

<mosaic_0001>
module attributes {stable_mosaic.version = 11 : i64} {
  func.func @linear_kernel(%arg0: memref<1x625xf32, #tpu.memory_space<vmem>>, %arg1: memref<2x626xf32, #tpu.memory_space<vmem>>, %arg2: memref<2x1xf32, #tpu.memory_space<vmem>>) attributes {dimension_semantics = [], scalar_prefetch = 0 : i64, scratch_operands = 0 : i64, tpu.core_type = #tpu.core_type<tc>} {
    %c0 = arith.constant 0 : index
    %c0_0 = arith.constant 0 : index
    %0 = vector.load %arg0[%c0, %c0_0] : memref<1x625xf32, #tpu.memory_space<vmem>>, vector<1x625xf32>
    %c0_1 = arith.constant 0 : index
    %c0_2 = arith.constant 0 : index
    %1 = vector.load %arg1[%c0_1, %c0_2] : memref<2x626xf32, #tpu.memory_space<vmem>>, vector<2x625xf32>
    %2 = vector.broadcast %0 : vector<1x625xf32> to vector<2x625xf32>
    %3 = arith.mulf %2, %1 : vector<2x625xf32>
    %c0_3 = arith.constant 0 : index
    %c625 = arith.constant 625 : index
    %4 = vector.load %arg1[%c0_3, %c625] : memref<2x626xf32, #tpu.memory_space<vmem>>, vector<2x1xf32>
    %cst = arith.constant dense<0.000000e+00> : vector<2xf32>
    %5 = vector.multi_reduction <add>, %3, %cst [1] : vector<2x625xf32> to vector<2xf32>
    %6 = vector.shape_cast %5 : vector<2xf32> to vector<2x1xf32>
    %7 = arith.addf %6, %4 : vector<2x1xf32>
    %c0_4 = arith.constant 0 : index
    %c0_5 = arith.constant 0 : index
    %8 = vector.load %arg2[%c0_4, %c0_5] : memref<2x1xf32, #tpu.memory_space<vmem>>, vector<2x1xf32>
    tpu.vector_store %arg2[%c0_4, %c0_5], %7 {strides = array<i32>} : memref<2x1xf32, #tpu.memory_space<vmem>>, vector<2x1xf32>,
    return
  }
}

</mosaic_0001>

<bundles_post_ra>
// kernel: tpu_custom_call.1
= control target key start
LH: loop header
LB: loop body
LE: loop exit
PB: predicated region body
PF: predicated region fallthrough
CT: control target
= control target key end

     0   :  { %7 = vsyncpa [#allocation3], 0  ;;  %s229_s0 = inlined_call_operand.hbm [shape: f32[1,625], index: 0, kind: input, shape index: {}]   ;;  %s230_s1 = inlined_call_operand.hbm [shape: f32[2,626], index: 1, kind: input, shape index: {}]   ;;  %s231_s2 = inlined_call_operand.vmem [shape: f32[2,1], index: 2, kind: output, shape index: {}]  }
   0x1   :  { %8 = vsyncpa [#allocation5], 0  ;;  %s179_s9 = smov [#allocation2]   ;;  %s180_s11 = smov [#allocation4]  }
   0x2   :  { %s15_s10 = sshll.u32 %s179_s9, 4  ;;  %s25_s12 = sshll.u32 %s180_s11, 4  ;;  %s16_s10 = int_to_ptr.vmem [resolvable:$true] %s15_s10  ;;  %s26_s12 = int_to_ptr.vmem [resolvable:$true] %s25_s12 }
   0x3   :  { %s131_s15 = scalar_lea.hbm %s229_s0, 80 }
   0x4   :  { %p132_p0 = scmp.ne.s32.totalorder %s229_s0, %s131_s15  ;;  %p135_p1 = scmp.lt.u32.totalorder %s131_s15, %s229_s0 }
   0x6   :  { %p137_p2 = pnand %p135_p1, %p132_p0 }
   0x8   :  { %140 = shalt.err (!%p137_p2)
}
   0x9   :  { %s141_s20 = scalar_lea.vmem %s16_s10, 80  ;;  %s145_s21 = scalar_lea.vmem %s16_s10, 96 }
   0xa   :  { %p142_p3 = scmp.ne.s32.totalorder %s16_s10, %s141_s20  ;;  %p146_p4 = scmp.lt.s32.totalorder %s16_s10, %s16_s10 }
   0xb   :  { %p147_p5 = scmp.lt.s32.totalorder %s145_s21, %s141_s20 }
   0xd   :  { %p148_p6 = por %p147_p5, %p146_p4 }
   0xf   :  { %p149_p7 = pnand %p148_p6, %p142_p3 }
  0x11   :  { %152 = shalt.err (!%p149_p7)
}
  0x12   :  { %18 = dma.hbm_to_vmem [thread:$0]  %s229_s0, 80, %s16_s10, [#allocation3]  }
  0x13   :  { %s153_s26 = scalar_lea.hbm %s230_s1, 160 }
  0x14   :  { %p154_p8 = scmp.ne.s32.totalorder %s230_s1, %s153_s26  ;;  %p157_p9 = scmp.lt.u32.totalorder %s153_s26, %s230_s1 }
  0x16   :  { %p159_p10 = pnand %p157_p9, %p154_p8 }
  0x18   :  { %162 = shalt.err (!%p159_p10)
}
  0x19   :  { %s163_s3 = scalar_lea.vmem %s26_s12, 160  ;;  %p168_p12 = scmp.lt.s32.totalorder %s26_s12, %s26_s12 }
  0x1a   :  { %p164_p11 = scmp.ne.s32.totalorder %s26_s12, %s163_s3  ;;  %p169_p13 = scmp.lt.s32.totalorder %s163_s3, %s163_s3 }
  0x1c   :  { %p170_p0 = por %p169_p13, %p168_p12 }
  0x1e   :  { %p171_p1 = pnand %p170_p0, %p164_p11 }
  0x20   :  { %174 = shalt.err (!%p171_p1)
}
  0x21   :  { %28 = dma.hbm_to_vmem [thread:$0]  %s230_s1, 160, %s26_s12, [#allocation5]  }
  0x22   :  { %175 = dma.done.wait [#allocation3], 80  }
  0x23   :  { %176 = vsyncadd [#allocation3], 4294967216 }
  0x24   :  { %177 = dma.done.wait [#allocation5], 160  }
  0x25   :  { %178 = vsyncadd [#allocation5], 4294967136  ;;  %v39_v0 = vlaneseq  ;;  %v181_v1 = vmov 1983009808   ;;  %v35_v10 = vld [vmem:[#allocation2] sm:$0x1f] }
  0x26   :  { %v68_v2 = vunpack.c.l.s4 %v181_v1  ;;  %v36_v11 = vld [vmem:[#allocation4] sm:$0xff]  ;;  %vm100_vm0 = vcmask 1041408   ;;  %v125_v23 = vld.sshfl [vmem:[#allocation4 + $0x8] sm:$0x3 pattern:$0x76325410] }
  0x27   :  { %v40_v3 = vshrl.u32 %v39_v0, 7  ;;  %v66_v16 = vcombine.high %v36_v11, %v36_v11  ;;  %vm108_vm1 = vcmask 918528   ;;  %s182_s1 = smov 15   ;;  %vm117_vm2 = vcmask 1024  }
  0x28   :  { %v69_v4 = vunpack.c.0.s8 %v68_v2 }
  0x29   :  { %v41_v5 = vsub.s32 0, %v40_v3  ;;  %v45_v6 = vsub.s32 1, %v40_v3  ;;  %v49_v7 = vsub.s32 2, %v40_v3  ;;  %v53_v9 = vsub.s32 3, %v40_v3 }
  0x2a   :  { %v72_v8 = vsub.s32 %v69_v4, %v40_v3  ;;  %v57_v12 = vsub.s32 4, %v40_v3 }
  0x2b   :  { %v42_v13 = vrot.slane %v35_v10, %v41_v5  ;;  %v46_v14 = vrot.slane %v35_v10, %v45_v6  ;;  %v50_v15 = vrot.slane %v35_v10, %v49_v7  ;;  %v54_v18 = vrot.slane %v35_v10, %v53_v9 }
  0x2c   :  { %v73_v17 = vrot.slane %v36_v11, %v72_v8  ;;  %v58_v19 = vrot.slane %v35_v10, %v57_v12  ;;  %v80_v20 = vrot.slane %v66_v16, %v72_v8 }
  0x2e   :  { %v81_v21 = vcombine.high %v73_v17, %v73_v17  ;;  %v95_v22 = vmul.f32 %v73_v17, %v42_v13  ;;  %v82_v24 = vcombine.high %v80_v20, %v80_v20  ;;  %v97_v26 = vmul.f32 %v80_v20, %v50_v15 }
  0x2f   :  { %v99_v29 = vmul.f32 %v125_v23, %v58_v19 }
  0x30   :  { %v96_v25 = vmul.f32 %v81_v21, %v46_v14  ;;  %v101_v27 = vsel %vm100_vm0, %v95_v22, 0.0  ;;  %v98_v28 = vmul.f32 %v82_v24, %v54_v18  ;;  %v104_v31 = vsel %vm100_vm0, %v97_v26, 0.0 }
  0x31   :  { %v109_v35 = vsel %vm108_vm1, %v99_v29, 0.0 }
  0x32   :  { %v102_v30 = vsel %vm100_vm0, %v96_v25, 0.0  ;;  %v106_v33 = vsel %vm100_vm0, %v98_v28, 0.0 }
  0x33   :  { %v103_v32 = vadd.f32 %v102_v30, %v101_v27 }
  0x35   :  { %v105_v34 = vadd.f32 %v104_v31, %v103_v32 }
  0x37   :  { %v107_v36 = vadd.f32 %v106_v33, %v105_v34 }
  0x39   :  { %v110_v37 = vadd.f32 %v109_v35, %v107_v36 }
  0x3b   :  { %111 = vadd.xlane.f32.xlu0 %v110_v37 }
  0x51   :  { %113 = vrot.lane.b32.xlu0 %v125_v23, %s182_s1 }
  0xc8   :  { %v112_v38 = vpop.xlane.xlu0 %111 }
  0xcc   :  { %v114_v39 = vpop.permute.xlu0 %113 }
  0xcd   :  { %v116_v40 = vadd.f32 %v114_v39, %v112_v38 }
  0xcf   :  { %118 = vst.msk [vmem:[%s231_s2] sm:$0x3] %vm117_vm2, %v116_v40 }
  0xd0   :  { %123 = vsyncpa [#allocation3], 1 }
  0xd1   :  { %124 = vsyncpa [#allocation5], 1 }

</bundles_post_ra>
